<compile_context>
chip_gen: v5e
topology: v5e:2x2
jax: 0.10.0
libtpu: 0.0.40
codegen_flags: <defaults>
</compile_context>

<pallas_src>
import functools

import jax
import jax.numpy as jnp
from jax import lax
from jax.experimental import pallas as pl
from jax.experimental.pallas import tpu as pltpu


_EPS = 1e-8  # torch.cosine_similarity eps. NOTE: clamped per-row norm here
             # (torch clamps the product of norms); identical unless a row has
             # near-zero norm.


def _row_inv_norms(x32):
    # 1 / max(||x||_2, eps) per row, as rsqrt(max(sum x^2, eps^2)). Shape [rows, 1].
    return lax.rsqrt(jnp.maximum(jnp.sum(x32 * x32, axis=-1, keepdims=True),
                                 _EPS * _EPS))


def _softplus_neg(diff):
    # -log(sigmoid(diff)) == softplus(-diff), numerically stable.
    return jnp.maximum(-diff, 0.0) + jnp.log1p(jnp.exp(-jnp.abs(diff)))


# --------------------------------------------------------------------------
# Shared kernel: rows (i) x columns (j) x hidden-dim chunks (k).
#   a:        (tm, tk)  native dtype   anchor rows
#   b:        (tn, tk)  native dtype   column rows (negatives / pair columns)
#   a_scale:  (tm, 1)   f32            1/||a_i|| * (1/T)
#   b_inv:    (1, tn)   f32            1/||b_j||          (precomputed, no transpose)
#   base:     (tm, 1)   f32            paired / diagonal similarity (already / T)
# Loss terms softplus(base - sim) accumulate elementwise into loss_acc and are
# reduced once per row tile into a lane-dense (8,128) output block.
# --------------------------------------------------------------------------
def _sigmoid_contrast_kernel(a_ref, b_ref, a_scale_ref, b_inv_ref, base_ref,
                             out_ref, dot_acc, loss_acc, *, mask_diag):
    i = pl.program_id(0)
    j = pl.program_id(1)
    k = pl.program_id(2)
    last_j = pl.num_programs(1) - 1
    last_k = pl.num_programs(2) - 1

    @pl.when(jnp.logical_and(j == 0, k == 0))
    def _init_loss():
        loss_acc[...] = jnp.zeros_like(loss_acc)

    @pl.when(k == 0)
    def _init_dot():
        dot_acc[...] = jnp.zeros_like(dot_acc)

    # Native-dtype operands straight into the MXU, f32 accumulation over D chunks.
    dot_acc[...] += lax.dot_general(
        a_ref[...], b_ref[...],
        dimension_numbers=(((1,), (1,)), ((), ())),
        preferred_element_type=jnp.float32)

    @pl.when(k == last_k)
    def _accumulate_loss():
        # Two broadcast multiplies; 1/temperature already folded into a_scale.
        sim = (dot_acc[...] * a_scale_ref[...]) * b_inv_ref[...]
        terms = _softplus_neg(base_ref[...] - sim)            # (tm, tn) f32

        if mask_diag:
            tm, tn = terms.shape
            row0 = i * tm
            col0 = j * tn
            # Only tiles that actually straddle the global diagonal pay for the
            # iota + compare + select.
            on_diag = jnp.logical_and(row0 < col0 + tn, col0 < row0 + tm)

            @pl.when(on_diag)
            def _masked():
                row = row0 + lax.broadcasted_iota(jnp.int32, (tm, tn), 0)
                col = col0 + lax.broadcasted_iota(jnp.int32, (tm, tn), 1)
                # Reference fills the diagonal with 1e9 -> softplus term is exactly 0.
                loss_acc[...] += jnp.where(row == col, 0.0, terms)

            @pl.when(jnp.logical_not(on_diag))
            def _plain():
                loss_acc[...] += terms
        else:
            loss_acc[...] += terms

    @pl.when(jnp.logical_and(j == last_j, k == last_k))
    def _store():
        # One reduce + lane-dense store per row tile (not per grid step).
        out_ref[...] = jnp.full(out_ref.shape, jnp.sum(loss_acc[...]),
                                dtype=jnp.float32)


# --------------------------------------------------------------------------
# Tile pickers / checks
# --------------------------------------------------------------------------
def _pick_row_tile(n, itemsize):
    """Row tile: multiple of 8 dividing n, near the roofline target (512 for
    bf16, 256 for f32), capped so the "parallel" row axis has >= 2 tiles when
    possible (v7x megacore uses both TensorCores)."""
    if n % 8 != 0:
        return n                                    # single full block fallback
    target = 512 if itemsize < 4 else 256
    half = n // 2
    cap = half if (half >= 8 and half % 8 == 0) else n
    t = max(8, min(target, cap) // 8 * 8)
    while n % t:
        t -= 8
    return t


def _pick_col_tile(n, target=256):
    """Column tile: multiple of 128 dividing n (so the (1, n) inverse-norm row
    tiles lane-aligned), or the full dimension."""
    if n % 128 != 0:
        return n
    t = max(128, min(target, n) // 128 * 128)
    while n % t:
        t -= 128
    return t


def _pick_d_tile(d, tm, tn, itemsize, budget_bytes=16 * 1024 * 1024):
    """Hidden-dim chunk: multiple of 128 dividing d, sized so double-buffered
    (tm, tk) + (tn, tk) input blocks stay within `budget_bytes` (bounds VMEM on
    v7x's 64 MiB physical and v5e's small default scoped limit)."""
    if d % 128 != 0:
        return d
    per_col = 2 * (tm + tn) * itemsize              # bytes per unit of tk (x2 buffers)
    tk = max(128, min(d, (budget_bytes // per_col) // 128 * 128))
    while d % tk:
        tk -= 128
    return tk


def _check_row_tile(name, n, t):
    assert n % t == 0, f"{name}: size {n} not divisible by tile {t}"
    assert t == n or t % 8 == 0, f"{name}: tile {t} must be a multiple of 8 (or == {n})"


def _check_col_tile(name, n, t):
    assert n % t == 0, f"{name}: size {n} not divisible by tile {t}"
    assert t == n or t % 128 == 0, f"{name}: tile {t} must be a multiple of 128 (or == {n})"


# --------------------------------------------------------------------------
# Shared pallas_call wrapper: returns sum of softplus loss terms.
# --------------------------------------------------------------------------
def _sigmoid_contrast_sum(a, b, a_scale, b_inv, base, *, tm, tn, tk, mask_diag):
    M, D = a.shape
    N = b.shape[0]
    gi, gj, gk = M // tm, N // tn, D // tk
    itemsize = a.dtype.itemsize

    # Double-buffered inputs + f32 scratch + output; used both for the VMEM
    # limit (v5e's default scoped limit is 16 MiB) and as a sanity margin.
    est_vmem = (2 * (tm + tn) * tk * itemsize        # a, b blocks (x2 buffers)
                + 2 * (2 * tm + tn) * 4              # a_scale, base, b_inv blocks
                + 2 * tm * tn * 4                    # dot_acc + loss_acc scratch
                + 2 * 8 * 128 * 4)                   # output block
    vmem_limit = int(min(64 * 1024 * 1024, max(32 * 1024 * 1024, 2 * est_vmem)))

    # Negatives/columns are re-streamed gi times; anchors re-read gj times only
    # when D is actually chunked (gk > 1, block index changes as j resets k).
    bytes_accessed = ((gj if gk > 1 else 1) * M * D * itemsize
                      + gi * N * D * itemsize
                      + (2 * M + N) * 4
                      + gi * 8 * 128 * 4)

    kernel = functools.partial(_sigmoid_contrast_kernel, mask_diag=mask_diag)
    partials = pl.pallas_call(
        kernel,
        out_shape=jax.ShapeDtypeStruct((gi * 8, 128), jnp.float32),
        grid=(gi, gj, gk),
        in_specs=[
            pl.BlockSpec((tm, tk), lambda i, j, k: (i, k)),   # anchors
            pl.BlockSpec((tn, tk), lambda i, j, k: (j, k)),   # columns (negatives)
            pl.BlockSpec((tm, 1), lambda i, j, k: (i, 0)),    # 1/||a|| * 1/T
            pl.BlockSpec((1, tn), lambda i, j, k: (0, j)),    # 1/||b||  (row vector)
            pl.BlockSpec((tm, 1), lambda i, j, k: (i, 0)),    # paired / diag sim
        ],
        out_specs=pl.BlockSpec((8, 128), lambda i, j, k: (i, 0)),
        scratch_shapes=[
            pltpu.VMEM((tm, tn), jnp.float32),    # dot accumulator over D chunks
            pltpu.VMEM((tm, tn), jnp.float32),    # elementwise loss accumulator
        ],
        compiler_params=pltpu.CompilerParams(
            dimension_semantics=("parallel", "arbitrary", "arbitrary"),
            vmem_limit_bytes=vmem_limit),
        cost_estimate=pl.CostEstimate(
            flops=2 * M * N * D,
            transcendentals=2 * M * N,
            bytes_accessed=int(bytes_accessed)),
    )(a, b, a_scale, b_inv, base)

    # Each row-tile block is a splat of its partial sum; read one lane each.
    return jnp.sum(partials.reshape(gi, 8, 128)[:, 0, 0])


# --------------------------------------------------------------------------
# Public wrappers
# --------------------------------------------------------------------------
def pair_sigmoid_contrast_loss(x, y, temperature: float = 0.05, *,
                               tm=None, tn=None, tk=None):
    """PairSigmoidContrastLoss.forward(x, y): scalar loss (diagonal excluded)."""
    assert x.shape == y.shape and x.ndim == 2
    B, D = x.shape
    assert B >= 2, "pair loss divides by B^2 - B; need batch >= 2"
    itemsize = x.dtype.itemsize
    tm = _pick_row_tile(B, itemsize) if tm is None else tm
    tn = _pick_col_tile(B) if tn is None else tn
    tk = _pick_d_tile(D, tm, tn, itemsize) if tk is None else tk
    _check_row_tile("pair rows", B, tm)
    _check_col_tile("pair cols", B, tn)
    _check_col_tile("pair hidden", D, tk)

    inv_temp = float(1.0 / temperature)
    x32 = x.astype(jnp.float32)
    y32 = y.astype(jnp.float32)
    x_inv = _row_inv_norms(x32)                                   # (B, 1)
    y_inv = _row_inv_norms(y32)                                   # (B, 1)
    x_scale = x_inv * inv_temp                                    # fold 1/T once
    y_inv_row = jnp.transpose(y_inv)                              # (1, B)
    diag_sim = (jnp.sum(x32 * y32, axis=-1, keepdims=True)
                * x_inv * y_inv * inv_temp)                       # (B, 1)

    total = _sigmoid_contrast_sum(x, y, x_scale, y_inv_row, diag_sim,
                                  tm=tm, tn=tn, tk=tk, mask_diag=True)
    return total / jnp.float32(B * B - B)


def triplet_sigmoid_contrast_loss(text_embeddings, text_pos_embeddings,
                                  text_neg_embeddings,
                                  temperature: float = 0.05,
                                  add_swap_loss: bool = False, *,
                                  tm=None, tn=None, tk=None):
    """TripletSigmoidContrastLoss.forward: scalar loss."""
    assert text_embeddings.shape == text_pos_embeddings.shape
    assert text_embeddings.ndim == 2 and text_neg_embeddings.ndim == 2
    assert text_embeddings.shape[1] == text_neg_embeddings.shape[1]
    B, D = text_embeddings.shape
    Bn = text_neg_embeddings.shape[0]
    itemsize = text_embeddings.dtype.itemsize
    tm = _pick_row_tile(B, itemsize) if tm is None else tm
    tn = _pick_col_tile(Bn) if tn is None else tn
    tk = _pick_d_tile(D, tm, tn, itemsize) if tk is None else tk
    _check_row_tile("anchor rows", B, tm)
    _check_col_tile("negative rows", Bn, tn)
    _check_col_tile("hidden dim", D, tk)

    inv_temp = float(1.0 / temperature)
    t32 = text_embeddings.astype(jnp.float32)
    p32 = text_pos_embeddings.astype(jnp.float32)
    n32 = text_neg_embeddings.astype(jnp.float32)
    t_inv = _row_inv_norms(t32)                                   # (B, 1)
    a_scale = t_inv * inv_temp                                    # (B, 1)
    n_inv_row = jnp.transpose(_row_inv_norms(n32))                # (1, Bn)
    pos_sim = (jnp.sum(t32 * p32, axis=-1, keepdims=True)
               * t_inv * _row_inv_norms(p32) * inv_temp)          # (B, 1)

    total = _sigmoid_contrast_sum(text_embeddings, text_neg_embeddings,
                                  a_scale, n_inv_row, pos_sim,
                                  tm=tm, tn=tn, tk=tk, mask_diag=False)
    loss = total / jnp.float32(B * Bn)
    if add_swap_loss:
        loss = loss + pair_sigmoid_contrast_loss(
            text_pos_embeddings, text_embeddings, temperature)
    return loss


# --------------------------------------------------------------------------
# Pure-JAX references mirroring the PyTorch module (for sanity checking).
# --------------------------------------------------------------------------
def _reference_pair(x, y, temperature=0.05):
    x32 = x.astype(jnp.float32)
    y32 = y.astype(jnp.float32)
    dots = x32 @ y32.T
    denom = jnp.maximum(
        jnp.linalg.norm(x32, axis=-1, keepdims=True)
        * jnp.linalg.norm(y32, axis=-1, keepdims=True).T, 1e-8)
    sim = dots / denom / temperature
    Bq = sim.shape[0]
    diag = jnp.diag(sim)[:, None]
    diff = diag - sim
    diff = jnp.where(jnp.eye(Bq, dtype=bool), 1e9, diff)
    return jnp.sum(-jax.nn.log_sigmoid(diff)) / (Bq * Bq - Bq)


def _reference_triplet(text, pos, neg, temperature=0.05, add_swap_loss=False):
    t = text.astype(jnp.float32)
    p = pos.astype(jnp.float32)
    n = neg.astype(jnp.float32)
    sim_pos = (jnp.sum(t * p, axis=-1)
               / jnp.maximum(jnp.linalg.norm(t, axis=-1)
                             * jnp.linalg.norm(p, axis=-1), 1e-8)) / temperature
    dots = t @ n.T
    denom = jnp.maximum(
        jnp.linalg.norm(t, axis=-1, keepdims=True)
        * jnp.linalg.norm(n, axis=-1, keepdims=True).T, 1e-8)
    sim_neg = dots / denom / temperature
    diff = sim_pos[:, None] - sim_neg
    loss = jnp.mean(-jax.nn.log_sigmoid(diff))
    if add_swap_loss:
        loss = loss + _reference_pair(p, t, temperature)
    return loss


if __name__ == "__main__":
    key = jax.random.PRNGKey(0)
    k1, k2, k3 = jax.random.split(key, 3)
    B, Bn, D = 64, 256, 256
    text = jax.random.normal(k1, (B, D), dtype=jnp.float32)
    pos = jax.random.normal(k2, (B, D), dtype=jnp.float32)
    neg = jax.random.normal(k3, (Bn, D), dtype=jnp.float32)

    # f32 with an explicit multi-tile grid (2 x 2 x 2) + swap (diag-masked) loss.
    loss = triplet_sigmoid_contrast_loss(text, pos, neg, temperature=0.05,
                                         add_swap_loss=True,
                                         tm=32, tn=128, tk=128)
    loss = jax.block_until_ready(loss)
    ref = _reference_triplet(text, pos, neg, 0.05, add_swap_loss=True)
    assert jnp.allclose(loss, ref, rtol=1e-3, atol=1e-3), (loss, ref)

    # bf16 inputs feed the MXU natively; default tile pickers.
    loss_bf16 = triplet_sigmoid_contrast_loss(
        text.astype(jnp.bfloat16), pos.astype(jnp.bfloat16),
        neg.astype(jnp.bfloat16), temperature=0.05, add_swap_loss=False)
    loss_bf16 = jax.block_until_ready(loss_bf16)
    ref_bf16 = _reference_triplet(text.astype(jnp.bfloat16),
                                  pos.astype(jnp.bfloat16),
                                  neg.astype(jnp.bfloat16), 0.05, False)
    assert jnp.allclose(loss_bf16, ref_bf16, rtol=2e-2, atol=2e-2), (loss_bf16,
                                                                     ref_bf16)

    print("KERNEL_OK")
</pallas_src>

<mosaic_0001>
module attributes {stable_mosaic.version = 11 : i64} {
  func.func @_sigmoid_contrast_kernel(%arg0: i32, %arg1: i32, %arg2: i32, %arg3: memref<32x128xf32, #tpu.memory_space<vmem>>, %arg4: memref<128x128xf32, #tpu.memory_space<vmem>>, %arg5: memref<32x1xf32, #tpu.memory_space<vmem>>, %arg6: memref<1x128xf32, #tpu.memory_space<vmem>>, %arg7: memref<32x1xf32, #tpu.memory_space<vmem>>, %arg8: memref<8x128xf32, #tpu.memory_space<vmem>>, %arg9: memref<32x128xf32, #tpu.memory_space<vmem>>, %arg10: memref<32x128xf32, #tpu.memory_space<vmem>>) attributes {dimension_semantics = [#tpu.dimension_semantics<parallel>, #tpu.dimension_semantics<arbitrary>, #tpu.dimension_semantics<arbitrary>], iteration_bounds = array<i64: 2, 2, 2>, scalar_prefetch = 0 : i64, scratch_operands = 2 : i64, tpu.core_type = #tpu.core_type<tc>, window_params = [{transform_indices = @transform_0, window_bounds = array<i64: 32, 128>}, {transform_indices = @transform_1, window_bounds = array<i64: 128, 128>}, {transform_indices = @transform_2, window_bounds = array<i64: 32, 1>}, {transform_indices = @transform_3, window_bounds = array<i64: 1, 128>}, {transform_indices = @transform_4, window_bounds = array<i64: 32, 1>}, {transform_indices = @transform_5, window_bounds = array<i64: 8, 128>}]} {
    %c0_i32 = arith.constant 0 : i32
    %0 = arith.cmpi eq, %arg1, %c0_i32 : i32
    %c0_i32_0 = arith.constant 0 : i32
    %1 = arith.cmpi eq, %arg2, %c0_i32_0 : i32
    %2 = arith.andi %0, %1 : i1
    %3 = arith.extui %2 : i1 to i32
    %c0_i32_1 = arith.constant 0 : i32
    %4 = arith.cmpi ne, %3, %c0_i32_1 : i32
    scf.if %4 {
      %cst_15 = arith.constant 0.000000e+00 : f32
      %22 = vector.broadcast %cst_15 : f32 to vector<32x128xf32>
      %c0_16 = arith.constant 0 : index
      %c0_17 = arith.constant 0 : index
      %23 = vector.load %arg10[%c0_16, %c0_17] : memref<32x128xf32, #tpu.memory_space<vmem>>, vector<32x128xf32>
      tpu.vector_store %arg10[%c0_16, %c0_17], %22 {strides = array<i32>} : memref<32x128xf32, #tpu.memory_space<vmem>>, vector<32x128xf32>,
    } else {
    }
    %c0_i32_2 = arith.constant 0 : i32
    %5 = arith.cmpi eq, %arg2, %c0_i32_2 : i32
    %6 = arith.extui %5 : i1 to i32
    %c0_i32_3 = arith.constant 0 : i32
    %7 = arith.cmpi ne, %6, %c0_i32_3 : i32
    scf.if %7 {
      %cst_15 = arith.constant 0.000000e+00 : f32
      %22 = vector.broadcast %cst_15 : f32 to vector<32x128xf32>
      %c0_16 = arith.constant 0 : index
      %c0_17 = arith.constant 0 : index
      %23 = vector.load %arg9[%c0_16, %c0_17] : memref<32x128xf32, #tpu.memory_space<vmem>>, vector<32x128xf32>
      tpu.vector_store %arg9[%c0_16, %c0_17], %22 {strides = array<i32>} : memref<32x128xf32, #tpu.memory_space<vmem>>, vector<32x128xf32>,
    } else {
    }
    %c0 = arith.constant 0 : index
    %c0_4 = arith.constant 0 : index
    %8 = vector.load %arg9[%c0, %c0_4] : memref<32x128xf32, #tpu.memory_space<vmem>>, vector<32x128xf32>
    %c0_5 = arith.constant 0 : index
    %c0_6 = arith.constant 0 : index
    %9 = vector.load %arg3[%c0_5, %c0_6] : memref<32x128xf32, #tpu.memory_space<vmem>>, vector<32x128xf32>
    %c0_7 = arith.constant 0 : index
    %c0_8 = arith.constant 0 : index
    %10 = vector.load %arg4[%c0_7, %c0_8] : memref<128x128xf32, #tpu.memory_space<vmem>>, vector<128x128xf32>
    %cst = arith.constant dense<0.000000e+00> : vector<32x128xf32>
    %11 = tpu.matmul %9, %10, %cst {dimension_numbers = #tpu.dot_dimension_numbers<[1], [1], [0], [0], [0, 0, 1, 0], [], []>} : vector<32x128xf32>, vector<128x128xf32>, vector<32x128xf32> -> vector<32x128xf32>
    %12 = arith.addf %8, %11 : vector<32x128xf32>
    %c0_9 = arith.constant 0 : index
    %c0_10 = arith.constant 0 : index
    %13 = vector.load %arg9[%c0_9, %c0_10] : memref<32x128xf32, #tpu.memory_space<vmem>>, vector<32x128xf32>
    tpu.vector_store %arg9[%c0_9, %c0_10], %12 {strides = array<i32>} : memref<32x128xf32, #tpu.memory_space<vmem>>, vector<32x128xf32>,
    %c1_i32 = arith.constant 1 : i32
    %14 = arith.cmpi eq, %arg2, %c1_i32 : i32
    %15 = arith.extui %14 : i1 to i32
    %c0_i32_11 = arith.constant 0 : i32
    %16 = arith.cmpi ne, %15, %c0_i32_11 : i32
    scf.if %16 {
      %c0_15 = arith.constant 0 : index
      %c0_16 = arith.constant 0 : index
      %22 = vector.load %arg9[%c0_15, %c0_16] : memref<32x128xf32, #tpu.memory_space<vmem>>, vector<32x128xf32>
      %c0_17 = arith.constant 0 : index
      %c0_18 = arith.constant 0 : index
      %23 = vector.load %arg5[%c0_17, %c0_18] : memref<32x1xf32, #tpu.memory_space<vmem>>, vector<32x1xf32>
      %24 = vector.broadcast %23 : vector<32x1xf32> to vector<32x128xf32>
      %25 = arith.mulf %22, %24 : vector<32x128xf32>
      %c0_19 = arith.constant 0 : index
      %c0_20 = arith.constant 0 : index
      %26 = vector.load %arg6[%c0_19, %c0_20] : memref<1x128xf32, #tpu.memory_space<vmem>>, vector<1x128xf32>
      %27 = vector.broadcast %26 : vector<1x128xf32> to vector<32x128xf32>
      %28 = arith.mulf %25, %27 : vector<32x128xf32>
      %c0_21 = arith.constant 0 : index
      %c0_22 = arith.constant 0 : index
      %29 = vector.load %arg7[%c0_21, %c0_22] : memref<32x1xf32, #tpu.memory_space<vmem>>, vector<32x1xf32>
      %30 = vector.broadcast %29 : vector<32x1xf32> to vector<32x128xf32>
      %31 = arith.subf %30, %28 : vector<32x128xf32>
      %cst_23 = arith.constant 0.000000e+00 : f32
      %32 = vector.broadcast %cst_23 : f32 to vector<32x128xf32>
      %33 = arith.subf %32, %31 : vector<32x128xf32>
      %cst_24 = arith.constant 0.000000e+00 : f32
      %34 = vector.broadcast %cst_24 : f32 to vector<32x128xf32>
      %35 = arith.maximumf %33, %34 : vector<32x128xf32>
      %36 = math.absf %31 : vector<32x128xf32>
      %cst_25 = arith.constant 0.000000e+00 : f32
      %37 = vector.broadcast %cst_25 : f32 to vector<32x128xf32>
      %38 = arith.subf %37, %36 : vector<32x128xf32>
      %39 = math.exp %38 : vector<32x128xf32>
      %40 = math.log1p %39 : vector<32x128xf32>
      %41 = arith.addf %35, %40 : vector<32x128xf32>
      %c0_26 = arith.constant 0 : index
      %c0_27 = arith.constant 0 : index
      %42 = vector.load %arg10[%c0_26, %c0_27] : memref<32x128xf32, #tpu.memory_space<vmem>>, vector<32x128xf32>
      %43 = arith.addf %42, %41 : vector<32x128xf32>
      %c0_28 = arith.constant 0 : index
      %c0_29 = arith.constant 0 : index
      %44 = vector.load %arg10[%c0_28, %c0_29] : memref<32x128xf32, #tpu.memory_space<vmem>>, vector<32x128xf32>
      tpu.vector_store %arg10[%c0_28, %c0_29], %43 {strides = array<i32>} : memref<32x128xf32, #tpu.memory_space<vmem>>, vector<32x128xf32>,
    } else {
    }
    %c1_i32_12 = arith.constant 1 : i32
    %17 = arith.cmpi eq, %arg1, %c1_i32_12 : i32
    %c1_i32_13 = arith.constant 1 : i32
    %18 = arith.cmpi eq, %arg2, %c1_i32_13 : i32
    %19 = arith.andi %17, %18 : i1
    %20 = arith.extui %19 : i1 to i32
    %c0_i32_14 = arith.constant 0 : i32
    %21 = arith.cmpi ne, %20, %c0_i32_14 : i32
    scf.if %21 {
      %c0_15 = arith.constant 0 : index
      %c0_16 = arith.constant 0 : index
      %22 = vector.load %arg10[%c0_15, %c0_16] : memref<32x128xf32, #tpu.memory_space<vmem>>, vector<32x128xf32>
      %23 = vector.shape_cast %22 : vector<32x128xf32> to vector<1x32x128xf32>
      %cst_17 = arith.constant dense<0.000000e+00> : vector<1xf32>
      %24 = vector.multi_reduction <add>, %23, %cst_17 [1, 2] : vector<1x32x128xf32> to vector<1xf32>
      %25 = vector.shape_cast %24 : vector<1xf32> to vector<1x1x1xf32>
      %26 = vector.extract %25[0, 0, 0] : f32 from vector<1x1x1xf32>
      %27 = vector.broadcast %26 : f32 to vector<8x128xf32>
      %c0_18 = arith.constant 0 : index
      %c0_19 = arith.constant 0 : index
      %28 = vector.load %arg8[%c0_18, %c0_19] : memref<8x128xf32, #tpu.memory_space<vmem>>, vector<8x128xf32>
      tpu.vector_store %arg8[%c0_18, %c0_19], %27 {strides = array<i32>} : memref<8x128xf32, #tpu.memory_space<vmem>>, vector<8x128xf32>,
    } else {
    }
    return
  }
  func.func @transform_0(%arg0: i32, %arg1: i32, %arg2: i32) -> (i32, i32) {
    %c0_i32 = arith.constant 0 : i32
    return %arg0, %arg2 : i32, i32
  }
  func.func @transform_1(%arg0: i32, %arg1: i32, %arg2: i32) -> (i32, i32) {
    %c0_i32 = arith.constant 0 : i32
    return %arg1, %arg2 : i32, i32
  }
  func.func @transform_2(%arg0: i32, %arg1: i32, %arg2: i32) -> (i32, i32) {
    %c0_i32 = arith.constant 0 : i32
    %c0_i32_0 = arith.constant 0 : i32
    return %arg0, %c0_i32 : i32, i32
  }
  func.func @transform_3(%arg0: i32, %arg1: i32, %arg2: i32) -> (i32, i32) {
    %c0_i32 = arith.constant 0 : i32
    %c0_i32_0 = arith.constant 0 : i32
    return %c0_i32, %arg1 : i32, i32
  }
  func.func @transform_4(%arg0: i32, %arg1: i32, %arg2: i32) -> (i32, i32) {
    %c0_i32 = arith.constant 0 : i32
    %c0_i32_0 = arith.constant 0 : i32
    return %arg0, %c0_i32 : i32, i32
  }
  func.func @transform_5(%arg0: i32, %arg1: i32, %arg2: i32) -> (i32, i32) {
    %c0_i32 = arith.constant 0 : i32
    %c0_i32_0 = arith.constant 0 : i32
    return %arg0, %c0_i32 : i32, i32
  }
}

</mosaic_0001>

<bundles_post_ra>
// kernel: tpu_custom_call.1
= control target key start
LH: loop header
LB: loop body
LE: loop exit
PB: predicated region body
PF: predicated region fallthrough
CT: control target
= control target key end

     0   :  { %s1577_s0 = inlined_call_operand.vmem [shape: f32[64,256], index: 0, kind: input, shape index: {}]   ;;  %s1578_s1 = inlined_call_operand.hbm [shape: f32[256,256], index: 1, kind: input, shape index: {}]   ;;  %s1579_s2 = inlined_call_operand.vmem [shape: f32[64,1], index: 2, kind: input, shape index: {}]   ;;  %s1580_s3 = inlined_call_operand.vmem [shape: f32[1,256], index: 3, kind: input, shape index: {}]   ;;  %s1581_s4 = inlined_call_operand.vmem [shape: f32[64,1], index: 4, kind: input, shape index: {}]   ;;  %s1582_s5 = inlined_call_operand.hbm [shape: f32[16,128], index: 5, kind: output, shape index: {}]  }
   0x1   :  { %1591 = sst [smem:[#allocation20_spill]] %s1577_s0 }
   0x2   :  { %1592 = sst [smem:[#allocation21_spill]] %s1578_s1 }
   0x3   :  { %1593 = sst [smem:[#allocation22_spill]] %s1579_s2 }
   0x4   :  { %1594 = sst [smem:[#allocation23_spill]] %s1580_s3 }
   0x5   :  { %1595 = sst [smem:[#allocation24_spill]] %s1581_s4 }
   0x6   :  { %1596 = sst [smem:[#allocation25_spill]] %s1582_s5 }
   0x7   :  { %10 = vsyncpa [#allocation6], 0 }
   0x8   :  { %12 = vsyncpa [#allocation6 + $0x1], 0 }
   0x9   :  { %13 = vsyncpa [#allocation7], 0 }
   0xa   :  { %15 = vsyncpa [#allocation7 + $0x1], 0  ;;  %s1260_s18 = smov 0   ;;  %s1262_s19 = smov 0  }
   0xb   :  { %s1264_s20 = smov 0   ;;  %s1266_s21 = smov 0  }
   0xc   :  { %s1268_s22 = smov 0   ;;  %s1270_s23 = smov 0  }
   0xd   :  { %s1272_s24 = smov 0   ;;  %s1274_s25 = smov 0  }
   0xe   :  { %s1276_s26 = smov 0   ;;  %s1278_s27 = smov 0  }
   0xf   :  { %s1280_s28 = smov 0   ;;  %s1282_s29 = smov 0  }
  0x10   :  { %s1284_s30 = smov 0   ;;  %s1286_s6 = smov 0  }
  0x11   :  { %s1288_s7 = smov 0  }
  0x12 LB: > { %1597 = sst [smem:[#allocation11_spill]] %s1174_s20  ;;  %s33_s10 = sadd.s32 1, %s1210_s29  ;;  %s1222_s7 = sphi %s1288_s7, %s21_s7   ;;  %s1218_s6 = sphi %s1286_s6, %s1631_s6   ;;  %s1214_s30 = sphi %s1284_s30, %s1640_s30   ;;  %s1210_s29 = sphi %s1282_s29, %s1639_s29   ;;  %s1206_s28 = sphi %s1280_s28, %s1628_s28   ;;  %s1202_s27 = sphi %s1278_s27, %s1638_s27   ;;  %s1198_s26 = sphi %s1276_s26, %s1637_s26   ;;  %s1194_s25 = sphi %s1274_s25, %s1627_s25   ;;  %s1190_s24 = sphi %s1272_s24, %s1626_s24   ;;  %s1186_s23 = sphi %s1270_s23, %s1636_s23   ;;  %s1182_s22 = sphi %s1268_s22, %s1635_s22   ;;  %s1178_s21 = sphi %s1266_s21, %s1634_s21   ;;  %s1174_s20 = sphi %s1264_s20, %s1624_s20   ;;  %s1170_s19 = sphi %s1262_s19, %s1633_s19   ;;  %s1166_s18 = sphi %s1260_s18, %s1632_s18  }
  0x13   : > { %1598 = sst [smem:[#allocation12_spill]] %s1194_s25  ;;  %s36_s11 = sadd.s32 1, %s1214_s30 }
  0x14   : > { %1599 = sst [smem:[#allocation13_spill]] %s1218_s6  ;;  %p34_p0 = scmp.ge.s32.totalorder %s33_s10, 2 }
  0x15   : > { %s40_s12 = sadd.s32 1, %s1218_s6  ;;  %s49_s13 = sadd.s32 1, %s1194_s25 }
  0x16   : > { %p56_p1 = scmp.ne.s32.totalorder %s1194_s25, %s1190_s24  ;;  %s1642_s10 = smov (%p34_p0, %s33_s10), 0 }
  0x17   : > { %1600 = sst [smem:[#allocation14_spill]] %s1642_s10  ;;  %s1644_s11 = smov (!%p34_p0, %s36_s11), %s1214_s30 }
  0x18   : > { %s45_s14 = ssub.s32 %s1210_s29, %s1642_s10  ;;  %p57_p2 = scmp.eq.s32.totalorder %s1222_s7, 0 }
  0x19   : > { %p38_p3 = scmp.ge.s32.totalorder %s1644_s11, 2  ;;  %s77_s15 = sadd.s32 1, %s1186_s23 }
  0x1a   : > { %p1350_p4 = por %p57_p2, %p56_p1  ;;  %p84_p5 = scmp.ne.s32.totalorder %s1186_s23, %s1182_s22 }
  0x1b   : > { %s1646_s11 = smov (%p38_p3, %s1644_s11), 0  ;;  %s1648_s12 = smov (!%p38_p3, %s40_s12), %s1218_s6 }
  0x1c   : > { %1602 = sst [smem:[#allocation15_spill]] %s1646_s11  ;;  %s72_s17 = ssub.s32 %s1214_s30, %s1646_s11 }
  0x1d   : > { %p1361_p6 = por %p84_p5, %p57_p2  ;;  %p42_p7 = scmp.ge.s32.totalorder %s1648_s12, 2 }
  0x1e   : > { %s74_s8 = sor.u32 %s72_s17, %s45_s14  ;;  %p90_p9 = scmp.ne.s32.totalorder %s1182_s22, %s1178_s21 }
  0x1f   : > { %p75_p8 = scmp.eq.s32.totalorder %s74_s8, 0  ;;  %s1650_s12 = smov (%p42_p7, %s1648_s12), 0 }
  0x20   : > { %1604 = sst [smem:[#allocation16_spill]] %s1650_s12  ;;  %s44_s11 = ssub.s32 %s1218_s6, %s1650_s12 }
  0x21   : > { %s1370_s10 = scalar_select %p75_p8, %s1186_s23, %s77_s15  }
  0x22   : > { %s1606_s5 = sadd.s32 4294967295, %s1222_s7   ;;  %s46_s4 = sor.u32 %s45_s14, %s44_s11 }
  0x23   : > { %1605 = sst [smem:[#allocation17_spill]] %s1370_s10  ;;  %p91_p10 = scmp.eq.s32.totalorder %s1606_s5, 0 }
  0x24   : > { %p179_p11 = scmp.eq.s32.totalorder %s44_s11, 0  ;;  %p47_p12 = scmp.eq.s32.totalorder %s46_s4, 0 }
  0x25   : > { %p1376_p13 = por %p91_p10, %p90_p9  ;;  %s181_s17 = sadd.s32 1, %s1174_s20 }
  0x26   : > { %p191_p0 = scmp.ne.s32.totalorder %s1174_s20, %s1170_s19  ;;  %s1610_s2 = smov %s1606_s5 }
  0x27   : > { %s1384_s8 = scalar_select %p47_p12, %s1194_s25, %s49_s13  }
  0x28   : > { %s1387_s21 = scalar_select %p179_p11, %s1174_s20, %s181_s17  }
  0x29   : > { %1608 = sst [smem:[#allocation18_spill]] %s1384_s8  ;;  %p192_p1 = scmp.eq.s32.totalorder %s1610_s2, 7 }
  0x2a   : > { %1609 = sst [smem:[#allocation19_spill]] %s1387_s21  ;;  %p197_p2 = scmp.ne.s32.totalorder %s1170_s19, %s1166_s18 }
  0x2b   : > { %s1611_s15 = sadd.s32 4294967294, %s1222_s7   ;;  %p1395_p5 = por %p192_p1, %p191_p0 }
  0x2c   : > { %p198_p3 = scmp.eq.s32.totalorder %s1611_s15, 7  ;;  %p810_p8 = scmp.ge.s32.totalorder %s1222_s7, 8 }
  0x2e   : > { %p1399_p7 = por %p198_p3, %p197_p2  ;;  %214 = sbr.rel (%p810_p8) target bundleno = 77 (0x4d), region = 16 }
  0x33   : > { %217 = sbr.rel (!%p1350_p4) target bundleno = 65 (0x41), region = 20  ;;  %s219_s2 = sand.u32 (%p1350_p4), 1, %s1194_s25  }
  0x34   : > { %s833_s11 = sshll.u32 (%p1350_p4), %s1218_s6, 3  ;;  %s811_s13 = sshll.u32 (%p1350_p4), %s219_s2, 5 }
  0x35   : > { %s224_s14 = sadd.s32 (%p1350_p4), %s1210_s29, %s833_s11  ;;  %s1614_s0 = sld [smem:[#allocation20_spill]] (%p1350_p4) }
  0x36   : > { %s814_s17 = sshll.u32 (%p1350_p4), %s224_s14, 3  ;;  %s221_s10 = scalar_lea.vmem (%p1350_p4), [#allocation4], %s811_s13 }
  0x3b   : > { %s226_s8 = scalar_lea.vmem %s1614_s0, %s814_s17 }
  0x3c   : > { %v261_v0 = vld [vmem:[%s226_s8] sm:$0xff]  ;;  %v263_v1 = vld [vmem:[%s226_s8 + $0x10] sm:$0xff] }
  0x3d   : > { %v265_v2 = vld [vmem:[%s226_s8 + $0x20] sm:$0xff]  ;;  %262 = vst [vmem:[%s221_s10] sm:$0xff] %v261_v0  ;;  %v267_v3 = vld [vmem:[%s226_s8 + $0x30] sm:$0xff] }
  0x3e   : > { %264 = vst [vmem:[%s221_s10 + $0x8] sm:$0xff] %v263_v1 }
  0x3f   : > { %266 = vst [vmem:[%s221_s10 + $0x10] sm:$0xff] %v265_v2 }
  0x40   : > { %268 = vst [vmem:[%s221_s10 + $0x18] sm:$0xff] %v267_v3 }
  0x41 PF: > { %s275_s16 = sand.u32 1, %s1186_s23   ;;  %s834_s2 = sshll.u32 %s1214_s30, 5 }
  0x42   : > { %s815_s11 = sshll.u32 %s275_s16, 7  ;;  %s284_s14 = sadd.s32 %s1210_s29, %s834_s2 }
  0x43   : > { %s818_s12 = sshll.u32 %s284_s14, 3  ;;  %s279_s17 = scalar_lea.vmem [#allocation5], %s815_s11 }
  0x44   : > { %s289_s15 = sshll.u32 %s279_s17, 4  ;;  %s1615_s1 = sld [smem:[#allocation21_spill]]  ;;  %s290_s15 = int_to_ptr.vmem [resolvable:$true] %s289_s15 }
  0x45   : > { %s276_s10 = scalar_lea.sflag [#allocation6], %s275_s16  ;;  %s1224_s25 = smov 256  }
  0x46   : > { %s1225_s21 = smov 128   ;;  %s1226_s20 = smov 8  }
  0x4a   : > { %s286_s13 = scalar_lea.hbm %s1615_s1, %s818_s12 }
  0x4b   : > { %s287_s8 = sshll.u32 %s286_s13, 4  ;;  %s288_s8 = int_to_ptr.hbm [resolvable:$true] %s287_s8 }
  0x4c   : > { %885 = dma.hbm_to_vmem [thread:$0]  (%p1361_p6), %s288_s8, 2048, %s290_s15, %s276_s10, %s1224_s25, %s1225_s21, %s1226_s20  }
  0x4d PF: > { %p819_p4 = scmp.ge.s32.totalorder %s1222_s7, 1  ;;  %p321_p9 = scmp.lt.s32.totalorder %s1222_s7, 9 }
  0x4f   : > { %p322_p10 = pnand %p819_p4, %p321_p9 }
  0x50   : > { %s328_s0 = sand.u32 (!%p322_p10), 1, %s1190_s24   ;;  %s334_s6 = sand.u32 (!%p322_p10), 1, %s1182_s22  }
  0x51   : > { %325 = sbr.rel (%p322_p10) target bundleno = 701 (0x2bd), region = 74  ;;  %s820_s2 = sshll.u32 (!%p322_p10), %s328_s0, 5 }
  0x52   : > { %s821_s11 = sshll.u32 (!%p322_p10), %s334_s6, 7  ;;  %s1424_s16 = scalar_lea.vmem (!%p322_p10), [#allocation4], %s820_s2 }
  0x53   : > { %s335_s14 = scalar_lea.sflag (!%p322_p10), [#allocation6], %s334_s6  ;;  %s1426_s12 = scalar_lea.vmem (!%p322_p10), [#allocation5], %s821_s11 }
  0x56   : > { %1157 = dma.done.wait (%p1376_p13), %s335_s14, 2048  }
  0x57   : > { %1159 = vsyncadd (%p1376_p13), %s335_s14, 4294965248  ;;  %s1590_s20 = sand.u32 1, %s1170_s19   ;;  %s823_s24 = sshll.u32 %s1206_s28, 2 }
  0x58   : > { %s1436_s25 = sshll.u32 %s1590_s20, 3  ;;  %p386_p6 = scmp.lt.s32.totalorder %s823_s24, 7 }
  0x59   : > { %p391_p11 = scmp.lt.s32.totalorder %s1202_s27, 1  ;;  %p400_p12 = scmp.eq.s32.totalorder %s1202_s27, 0 }
  0x5a   : > { %s1652_s24 = smov (!%p386_p6, %s823_s24), 7  ;;  %s1616_s15 = sld [smem:[#allocation22_spill]] }
  0x5b   : > { %s1440_s9 = scalar_select %p391_p11, %s1202_s27, 1 }
  0x5c   : > { %s824_s3 = sshll.u32 %s1652_s24, 3  ;;  %s1617_s0 = sld [smem:[#allocation23_spill]] }
  0x5d   : > { %s1618_s14 = sld [smem:[#allocation24_spill]]  ;;  %p401_p13 = scmp.eq.s32.totalorder %s1198_s26, 0 }
  0x5e   : > { %s382_s1 = scalar_lea.vmem [#allocation8], %s1436_s25 }
  0x5f   : > { %p402_p0 = pnand %p401_p13, %p400_p12 }
  0x60   : > { %s1446_s13 = scalar_lea.vmem %s1616_s15, %s824_s3 }
  0x61   : > { %405 = sbr.rel (%p402_p0) target bundleno = 107 (0x6b), region = 86 }
  0x62   : > { %s393_s6 = scalar_lea.vmem %s1617_s0, %s1440_s9 }
  0x63   : > { %s1455_s20 = scalar_lea.vmem %s1618_s14, %s824_s3 }
  0x66   : > { %v1227_v4 = vmov 0.0  }
  0x67   : > { %406 = vst [vmem:[#allocation3] sm:$0xff] %v1227_v4 }
  0x68   : > { %407 = vst [vmem:[#allocation3 + $0x18] sm:$0xff] %v1227_v4 }
  0x69   : > { %408 = vst [vmem:[#allocation3 + $0x8] sm:$0xff] %v1227_v4 }
  0x6a   : > { %409 = vst [vmem:[#allocation3 + $0x10] sm:$0xff] %v1227_v4 }
  0x6b PF: > { %p827_p1 = scmp.ne.s32.totalorder %s1198_s26, 0 }
  0x6d   : > { %412 = sbr.rel (%p827_p1) target bundleno = 119 (0x77), region = 90 }
  0x72   : > { %v1228_v5 = vmov 0.0  }
  0x73   : > { %413 = vst [vmem:[#allocation2 + $0x10] sm:$0xff] %v1228_v5 }
  0x74   : > { %414 = vst [vmem:[#allocation2] sm:$0xff] %v1228_v5 }
  0x75   : > { %415 = vst [vmem:[#allocation2 + $0x18] sm:$0xff] %v1228_v5 }
  0x76   : > { %416 = vst [vmem:[#allocation2 + $0x8] sm:$0xff] %v1228_v5 }
  0x77 PF: > { %v440_v6 = vld [vmem:[%s1426_s12 + $0x78] sm:$0xff]  ;;  %v439_v7 = vld [vmem:[%s1426_s12 + $0x70] sm:$0xff]  ;;  %v438_v8 = vld [vmem:[%s1426_s12 + $0x68] sm:$0xff]  ;;  %p478_p2 = scmp.eq.s32.totalorder %s1198_s26, 1  ;;  %p828_p3 = scmp.ne.s32.totalorder %s1198_s26, 1 }
  0x78   : > { %836 = vmatpush.xpose.msra.mxu2 %v440_v6  ;;  %837 = vmatpush.xpose.msra.mxu3 %v440_v6  ;;  %v437_v9 = vld [vmem:[%s1426_s12 + $0x60] sm:$0xff]  ;;  %v436_v10 = vld [vmem:[%s1426_s12 + $0x58] sm:$0xff]  ;;  %v435_v11 = vld [vmem:[%s1426_s12 + $0x50] sm:$0xff] }
  0x79   : > { %441 = vmatpush.xpose.msra.mxu0 %v440_v6  ;;  %835 = vmatpush.xpose.msra.mxu1 %v440_v6  ;;  %v434_v12 = vld [vmem:[%s1426_s12 + $0x48] sm:$0xff]  ;;  %v433_v13 = vld [vmem:[%s1426_s12 + $0x40] sm:$0xff]  ;;  %v432_v14 = vld [vmem:[%s1426_s12 + $0x38] sm:$0xff] }
  0x7a   : > { %v431_v15 = vld [vmem:[%s1426_s12 + $0x30] sm:$0xff]  ;;  %v430_v16 = vld [vmem:[%s1426_s12 + $0x28] sm:$0xff]  ;;  %v429_v17 = vld [vmem:[%s1426_s12 + $0x20] sm:$0xff] }
  0x7b   : > { %v428_v18 = vld [vmem:[%s1426_s12 + $0x18] sm:$0xff]  ;;  %v427_v19 = vld [vmem:[%s1426_s12 + $0x10] sm:$0xff]  ;;  %v426_v20 = vld [vmem:[%s1426_s12 + $0x8] sm:$0xff] }
  0x7c   : > { %839 = vmatpush.xpose.msra.mxu2 %v439_v7  ;;  %840 = vmatpush.xpose.msra.mxu3 %v439_v7  ;;  %v425_v21 = vld [vmem:[%s1426_s12] sm:$0xff]  ;;  %v423_v22 = vld [vmem:[%s1424_s16 + $0x10] sm:$0xff]  ;;  %v424_v23 = vld [vmem:[%s1424_s16 + $0x18] sm:$0xff] }
  0x7d   : > { %442 = vmatpush.xpose.msra.mxu0 %v439_v7  ;;  %838 = vmatpush.xpose.msra.mxu1 %v439_v7  ;;  %v421_v24 = vld [vmem:[%s1424_s16] sm:$0xff]  ;;  %v422_v25 = vld [vmem:[%s1424_s16 + $0x8] sm:$0xff]  ;;  %v417_v26 = vld [vmem:[#allocation2 + $0x10] sm:$0xff] }
  0x7e   : > { %v418_v27 = vld [vmem:[#allocation2] sm:$0xff]  ;;  %v419_v32 = vld [vmem:[#allocation2 + $0x18] sm:$0xff]  ;;  %v420_v33 = vld [vmem:[#allocation2 + $0x8] sm:$0xff] }
  0x80   : > { %842 = vmatpush.xpose.msra.mxu2 %v438_v8  ;;  %843 = vmatpush.xpose.msra.mxu3 %v438_v8 }
  0x81   : > { %443 = vmatpush.xpose.msra.mxu0 %v438_v8  ;;  %841 = vmatpush.xpose.msra.mxu1 %v438_v8 }
  0x84   : > { %845 = vmatpush.xpose.msra.mxu2 %v437_v9  ;;  %846 = vmatpush.xpose.msra.mxu3 %v437_v9 }
  0x85   : > { %444 = vmatpush.xpose.msra.mxu0 %v437_v9  ;;  %844 = vmatpush.xpose.msra.mxu1 %v437_v9 }
  0x88   : > { %848 = vmatpush.xpose.msra.mxu2 %v436_v10  ;;  %849 = vmatpush.xpose.msra.mxu3 %v436_v10 }
  0x89   : > { %445 = vmatpush.xpose.msra.mxu0 %v436_v10  ;;  %847 = vmatpush.xpose.msra.mxu1 %v436_v10 }
  0x8c   : > { %851 = vmatpush.xpose.msra.mxu2 %v435_v11  ;;  %852 = vmatpush.xpose.msra.mxu3 %v435_v11 }
  0x8d   : > { %446 = vmatpush.xpose.msra.mxu0 %v435_v11  ;;  %850 = vmatpush.xpose.msra.mxu1 %v435_v11 }
  0x90   : > { %854 = vmatpush.xpose.msra.mxu2 %v434_v12  ;;  %855 = vmatpush.xpose.msra.mxu3 %v434_v12 }
  0x91   : > { %447 = vmatpush.xpose.msra.mxu0 %v434_v12  ;;  %853 = vmatpush.xpose.msra.mxu1 %v434_v12 }
  0x94   : > { %857 = vmatpush.xpose.msra.mxu2 %v433_v13  ;;  %858 = vmatpush.xpose.msra.mxu3 %v433_v13 }
  0x95   : > { %448 = vmatpush.xpose.msra.mxu0 %v433_v13  ;;  %856 = vmatpush.xpose.msra.mxu1 %v433_v13 }
  0x98   : > { %860 = vmatpush.xpose.msra.mxu2 %v432_v14  ;;  %861 = vmatpush.xpose.msra.mxu3 %v432_v14 }
  0x99   : > { %449 = vmatpush.xpose.msra.mxu0 %v432_v14  ;;  %859 = vmatpush.xpose.msra.mxu1 %v432_v14 }
  0x9c   : > { %863 = vmatpush.xpose.msra.mxu2 %v431_v15  ;;  %864 = vmatpush.xpose.msra.mxu3 %v431_v15 }
  0x9d   : > { %450 = vmatpush.xpose.msra.mxu0 %v431_v15  ;;  %862 = vmatpush.xpose.msra.mxu1 %v431_v15 }
  0xa0   : > { %866 = vmatpush.xpose.msra.mxu2 %v430_v16  ;;  %867 = vmatpush.xpose.msra.mxu3 %v430_v16 }
  0xa1   : > { %451 = vmatpush.xpose.msra.mxu0 %v430_v16  ;;  %865 = vmatpush.xpose.msra.mxu1 %v430_v16 }
  0xa4   : > { %869 = vmatpush.xpose.msra.mxu2 %v429_v17  ;;  %870 = vmatpush.xpose.msra.mxu3 %v429_v17 }
  0xa5   : > { %452 = vmatpush.xpose.msra.mxu0 %v429_v17  ;;  %868 = vmatpush.xpose.msra.mxu1 %v429_v17 }
  0xa8   : > { %872 = vmatpush.xpose.msra.mxu2 %v428_v18  ;;  %873 = vmatpush.xpose.msra.mxu3 %v428_v18 }
  0xa9   : > { %453 = vmatpush.xpose.msra.mxu0 %v428_v18  ;;  %871 = vmatpush.xpose.msra.mxu1 %v428_v18 }
  0xac   : > { %875 = vmatpush.xpose.msra.mxu2 %v427_v19  ;;  %876 = vmatpush.xpose.msra.mxu3 %v427_v19 }
  0xad   : > { %454 = vmatpush.xpose.msra.mxu0 %v427_v19  ;;  %874 = vmatpush.xpose.msra.mxu1 %v427_v19 }
  0xb0   : > { %878 = vmatpush.xpose.msra.mxu2 %v426_v20  ;;  %879 = vmatpush.xpose.msra.mxu3 %v426_v20 }
  0xb1   : > { %455 = vmatpush.xpose.msra.mxu0 %v426_v20  ;;  %877 = vmatpush.xpose.msra.mxu1 %v426_v20 }
  0xb4   : > { %881 = vmatpush.xpose.msra.mxu2 %v425_v21  ;;  %882 = vmatpush.xpose.msra.mxu3 %v425_v21 }
  0xb5   : > { %456 = vmatpush.xpose.msra.mxu0 %v425_v21  ;;  %880 = vmatpush.xpose.msra.mxu1 %v425_v21 }
  0xb7   : > { %463 = vmatmul.f32.vlgmr.msra.gmra.mxu2 %v423_v22  ;;  %466 = vmatmul.f32.vlgmr.msra.gmra.mxu3 %v424_v23 }
  0xb8   : > { %457 = vmatmul.f32.vlgmr.msra.gmra.mxu0 %v421_v24  ;;  %460 = vmatmul.f32.vlgmr.msra.gmra.mxu1 %v422_v25 }
 0x135   : > { %v458_v28 = vpop.f32.mrf.mxu0  ;;  %v461_v29 = vpop.f32.mrf.mxu1 }
 0x136   : > { %v470_v30 = vadd.f32 %v458_v28, %v417_v26  ;;  %v471_v31 = vadd.f32 %v461_v29, %v418_v27 }
 0x138   : > { %474 = vst [vmem:[#allocation2 + $0x10] sm:$0xff] %v470_v30 }
 0x139   : > { %475 = vst [vmem:[#allocation2] sm:$0xff] %v471_v31 }
 0x13a   : > { %v464_v34 = vpop.f32.mrf.mxu2  ;;  %v467_v35 = vpop.f32.mrf.mxu3  ;;  %481 = sbr.rel (%p828_p3) target bundleno = 485 (0x1e5), region = 94 }
 0x13b   : > { %v472_v36 = vadd.f32 %v464_v34, %v419_v32  ;;  %v473_v37 = vadd.f32 %v467_v35, %v420_v33 }
 0x13d   : > { %476 = vst [vmem:[#allocation2 + $0x18] sm:$0xff] %v472_v36 }
 0x13e   : > { %477 = vst [vmem:[#allocation2 + $0x8] sm:$0xff] %v473_v37 }
 0x13f   : > { %v488_v38 = vld [vmem:[%s1446_s13 + $0x10] sm:$0xff]  ;;  %v486_v39 = vld [vmem:[%s1446_s13] sm:$0xff]  ;;  %v1229_v40 = vmov 0   ;;  %v489_v42 = vld [vmem:[%s1446_s13 + $0x18] sm:$0xff] }
 0x140   : > { %1021 = vset.pattern.permute.xlu1 %v1229_v40  ;;  %1020 = vset.pattern.permute.xlu0 %v1229_v40  ;;  %v522_v41 = vld [vmem:[%s1455_s20] sm:$0xff]  ;;  %v487_v43 = vld [vmem:[%s1446_s13 + $0x8] sm:$0xff]  ;;  %v525_v45 = vld [vmem:[%s1455_s20 + $0x18] sm:$0xff] }
 0x141   : > { %502 = vperm.xlu1 %1021, %v488_v38   ;;  %492 = vperm.xlu0 %1020, %v486_v39   ;;  %v523_v44 = vld [vmem:[%s1455_s20 + $0x8] sm:$0xff]  ;;  %v524_v46 = vld [vmem:[%s1455_s20 + $0x10] sm:$0xff]  ;;  %v1023_v48 = vld [vmem:[%s393_s6] ss:$0 sm:$0xff] }
 0x142   : > { %1022 = vset.pattern.permute.xlu2 %v1229_v40  ;;  %v482_v47 = vld [vmem:[#allocation2 + $0x10] sm:$0xff]  ;;  %v483_v55 = vld [vmem:[#allocation2] sm:$0xff] }
 0x143   : > { %528 = vperm.xlu2 %1022, %v522_v41   ;;  %v614_v34 = vld [vmem:[#allocation3] sm:$0xff] }
 0x144   : > { %v484_v57 = vld [vmem:[#allocation2 + $0x18] sm:$0xff] }
 0x145   : > { %v485_v59 = vld [vmem:[#allocation2 + $0x8] sm:$0xff] }
 0x149   : > { %507 = vperm.xlu1 %1021, %v489_v42   ;;  %497 = vperm.xlu0 %1020, %v487_v43  }
 0x14b   : > { %533 = vperm.xlu2 %1022, %v523_v44  }
 0x151   : > { %543 = vperm.xlu1 %1021, %v525_v45   ;;  %538 = vperm.xlu0 %1020, %v524_v46  }
 0x19d   : > { %v529_v52 = vpop.permute.xlu2 %528 }
 0x1a5   : > { %v534_v3 = vpop.permute.xlu2 %533 }
 0x1b3   : > { %v503_v49 = vpop.permute.xlu1 %502  ;;  %v493_v50 = vpop.permute.xlu0 %492 }
 0x1b4   : > { %v510_v51 = vmul.f32 %v493_v50, %v482_v47  ;;  %v512_v63 = vmul.f32 %v503_v49, %v484_v57 }
 0x1b6   : > { %v518_v53 = vmul.f32 %v1023_v48, %v510_v51  ;;  %v520_v7 = vmul.f32 %v1023_v48, %v512_v63 }
 0x1b8   : > { %v546_v54 = vsub.f32 %v529_v52, %v518_v53 }
 0x1ba   : > { %v558_v56 = vand.u32 2147483647, %v546_v54  ;;  %v550_v24 = vsub.f32 0.0, %v546_v54  ;;  %v615_v54 = vld [vmem:[#allocation3 + $0x18] sm:$0xff] }
 0x1bb   : > { %v508_v58 = vpop.permute.xlu1 %507  ;;  %v498_v60 = vpop.permute.xlu0 %497 }
 0x1bc   : > { %v562_v61 = vsub.f32 0.0, %v558_v56  ;;  %v511_v62 = vmul.f32 %v498_v60, %v483_v55  ;;  %v513_v1 = vmul.f32 %v508_v58, %v485_v59  ;;  %v554_v32 = vmax.f32 %v550_v24, 0.0 }
 0x1be   : > { %v566_v0 = vmul.f32 1.442695, %v562_v61  ;;  %v519_v2 = vmul.f32 %v1023_v48, %v511_v62  ;;  %v521_v6 = vmul.f32 %v1023_v48, %v513_v1 }
 0x1c0   : > { %1024 = vpow2.f32 %v566_v0  ;;  %v547_v4 = vsub.f32 %v534_v3, %v519_v2  ;;  %v617_v3 = vld [vmem:[#allocation3 + $0x10] sm:$0xff] }
 0x1c2   : > { %v559_v5 = vand.u32 2147483647, %v547_v4  ;;  %v551_v39 = vsub.f32 0.0, %v547_v4 }
 0x1c3   : > { %v544_v8 = vpop.permute.xlu1 %543  ;;  %v539_v9 = vpop.permute.xlu0 %538 }
 0x1c4   : > { %v563_v10 = vsub.f32 0.0, %v559_v5  ;;  %v549_v11 = vsub.f32 %v544_v8, %v521_v6  ;;  %v1495_v12 = vsub.f32 %v539_v9, %v520_v7  ;;  %v555_v51 = vmax.f32 %v551_v39, 0.0  ;;  %v616_v7 = vld [vmem:[#allocation3 + $0x8] sm:$0xff] }
 0x1c6   : > { %v1025_v13 = vpop.eup %1024  ;;  %v568_v14 = vmul.f32 1.442695, %v563_v10  ;;  %v561_v15 = vand.u32 2147483647, %v549_v11  ;;  %v560_v17 = vand.u32 2147483647, %v1495_v12 }
 0x1c7   : > { %v574_v16 = vadd.f32 1.0, %v1025_v13  ;;  %v577_v18 = vmul.f32 -0.5, %v1025_v13  ;;  %v580_v25 = vand.u32 2147483647, %v1025_v13  ;;  %v553_v49 = vsub.f32 0.0, %v549_v11 }
 0x1c8   : > { %1026 = vpow2.f32 %v568_v14  ;;  %v565_v19 = vsub.f32 0.0, %v561_v15  ;;  %v564_v20 = vsub.f32 0.0, %v560_v17  ;;  %v552_v56 = vsub.f32 0.0, %v1495_v12 }
 0x1c9   : > { %1028 = vlog2.f32 %v574_v16  ;;  %v578_v23 = vadd.f32 1.0, %v577_v18  ;;  %vm581_vm0 = vcmp.lt.f32.partialorder %v580_v25, 0.0004427343  ;;  %v557_v61 = vmax.f32 %v553_v49, 0.0 }
 0x1ca   : > { %v572_v21 = vmul.f32 1.442695, %v565_v19  ;;  %v570_v22 = vmul.f32 1.442695, %v564_v20  ;;  %v556_v5 = vmax.f32 %v552_v56, 0.0 }
 0x1cb   : > { %v579_v30 = vmul.f32 %v1025_v13, %v578_v23 }
 0x1cc   : > { %1030 = vpow2.f32 %v572_v21 }
 0x1cd   : > { %1032 = vpow2.f32 %v570_v22 }
 0x1ce   : > { %v1027_v26 = vpop.eup %1026 }
 0x1cf   : > { %v1029_v27 = vpop.eup %1028  ;;  %v583_v28 = vadd.f32 1.0, %v1027_v26  ;;  %v586_v31 = vmul.f32 -0.5, %v1027_v26  ;;  %v589_v44 = vand.u32 2147483647, %v1027_v26 }
 0x1d0   : > { %v576_v29 = vmul.f32 0.6931472, %v1029_v27 }
 0x1d1   : > { %1034 = vlog2.f32 %v583_v28  ;;  %v587_v40 = vadd.f32 1.0, %v586_v31  ;;  %vm590_vm1 = vcmp.lt.f32.partialorder %v589_v44, 0.0004427343 }
 0x1d2   : > { %v1031_v33 = vpop.eup %1030  ;;  %v582_v35 = vsel %vm581_vm0, %v579_v30, %v576_v29 }
 0x1d3   : > { %v1033_v36 = vpop.eup %1032  ;;  %v610_v37 = vadd.f32 %v582_v35, %v554_v32  ;;  %v601_v38 = vadd.f32 1.0, %v1031_v33  ;;  %v604_v41 = vmul.f32 -0.5, %v1031_v33  ;;  %v588_v48 = vmul.f32 %v1027_v26, %v587_v40 }
 0x1d4   : > { %v592_v42 = vadd.f32 1.0, %v1033_v36  ;;  %v595_v45 = vmul.f32 -0.5, %v1033_v36  ;;  %v607_v52 = vand.u32 2147483647, %v1031_v33  ;;  %v598_v57 = vand.u32 2147483647, %v1033_v36 }
 0x1d5   : > { %v618_v43 = vadd.f32 %v614_v34, %v610_v37  ;;  %1036 = vlog2.f32 %v601_v38  ;;  %v605_v50 = vadd.f32 1.0, %v604_v41 }
 0x1d6   : > { %1038 = vlog2.f32 %v592_v42  ;;  %v596_v53 = vadd.f32 1.0, %v595_v45  ;;  %vm608_vm2 = vcmp.lt.f32.partialorder %v607_v52, 0.0004427343  ;;  %vm599_vm3 = vcmp.lt.f32.partialorder %v598_v57, 0.0004427343 }
 0x1d7   : > { %v1035_v46 = vpop.eup %1034  ;;  %622 = vst [vmem:[#allocation3] sm:$0xff] %v618_v43  ;;  %v606_v63 = vmul.f32 %v1031_v33, %v605_v50 }
 0x1d8   : > { %v585_v47 = vmul.f32 0.6931472, %v1035_v46  ;;  %v597_v2 = vmul.f32 %v1033_v36, %v596_v53 }
 0x1da   : > { %v591_v55 = vsel %vm590_vm1, %v588_v48, %v585_v47 }
 0x1db   : > { %v1037_v58 = vpop.eup %1036  ;;  %v611_v59 = vadd.f32 %v591_v55, %v555_v51 }
 0x1dc   : > { %v1039_v60 = vpop.eup %1038  ;;  %v603_v62 = vmul.f32 0.6931472, %v1037_v58 }
 0x1dd   : > { %v619_v0 = vadd.f32 %v615_v54, %v611_v59  ;;  %v594_v1 = vmul.f32 0.6931472, %v1039_v60 }
 0x1de   : > { %v609_v4 = vsel %vm608_vm2, %v606_v63, %v603_v62 }
 0x1df   : > { %623 = vst [vmem:[#allocation3 + $0x18] sm:$0xff] %v619_v0  ;;  %v613_v6 = vadd.f32 %v609_v4, %v557_v61  ;;  %v600_v8 = vsel %vm599_vm3, %v597_v2, %v594_v1 }
 0x1e0   : > { %v612_v9 = vadd.f32 %v600_v8, %v556_v5 }
 0x1e1   : > { %v621_v10 = vadd.f32 %v617_v3, %v613_v6 }
 0x1e2   : > { %v620_v11 = vadd.f32 %v616_v7, %v612_v9 }
 0x1e3   : > { %625 = vst [vmem:[#allocation3 + $0x10] sm:$0xff] %v621_v10 }
 0x1e4   : > { %624 = vst [vmem:[#allocation3 + $0x8] sm:$0xff] %v620_v11 }
 0x1e5 PF: > { %p626_p8 = scmp.eq.s32.totalorder %s1202_s27, 1 }
 0x1e7   : > { %p627_p4 = pnand %p626_p8, %p478_p2 }
 0x1e9   : > { %630 = sbr.rel (%p627_p4) target bundleno = 681 (0x2a9), region = 98 }
 0x1ee   : > { %v631_v12 = vld [vmem:[#allocation3] sm:$0xff]  ;;  %v632_v13 = vld [vmem:[#allocation3 + $0x18] sm:$0xff]  ;;  %v633_v14 = vld [vmem:[#allocation3 + $0x8] sm:$0xff] }
 0x1ef   : > { %v635_v15 = vadd.f32 %v632_v13, %v631_v12  ;;  %v634_v16 = vld [vmem:[#allocation3 + $0x10] sm:$0xff] }
 0x1f1   : > { %v636_v17 = vadd.f32 %v635_v15, %v633_v14 }
 0x1f3   : > { %v637_v18 = vadd.f32 %v636_v17, %v634_v16 }
 0x1f5   : > { %638 = vadd.xlane.f32.xlu0 %v637_v18 }
 0x268   : > { %v639_v19 = vpop.xlane.xlu0 %638 }
 0x269   : > { %v640_v20 = vrot.slane %v639_v19, 4 }
 0x26b   : > { %v641_v21 = vadd.f32 %v640_v20, %v639_v19 }
 0x26d   : > { %v642_v22 = vrot.slane %v641_v21, 2 }
 0x26f   : > { %v643_v23 = vadd.f32 %v642_v22, %v641_v21 }
 0x271   : > { %v644_v24 = vrot.slane %v643_v23, 1 }
 0x273   : > { %v645_v25 = vadd.f32 %v644_v24, %v643_v23 }
 0x275   : > { %883 = vpush %v645_v25 }
 0x2a6   : > { %s884_s26 = spop %883 }
 0x2a7   : > { %v647_v26 = vstv %s884_s26 }
 0x2a8   : > { %648 = vst [vmem:[%s382_s1] sm:$0xff] %v647_v26 }
 0x2a9 PF: > { %s830_s27 = sshll.u32 %s1206_s28, 3  ;;  %s1620_s3 = sld [smem:[#allocation25_spill]] }
 0x2aa   : > { %s662_s17 = sshll.u32 %s382_s1, 4  ;;  %s1621_s13 = sand.u32 1, %s1170_s19   ;;  %s663_s17 = int_to_ptr.vmem [resolvable:$true] %s662_s17 }
 0x2ab   : > { %s650_s8 = scalar_lea.sflag [#allocation7], %s1621_s13 }
 0x2af   : > { %s660_s21 = scalar_lea.hbm %s1620_s3, %s830_s27  ;;  %s1088_s2 = scalar_lea.hbm %s1620_s3, 16 }
 0x2b0   : > { %s664_s15 = sshll.u32 %s660_s21, 4  ;;  %s665_s15 = int_to_ptr.hbm [resolvable:$true] %s664_s15 }
 0x2b1   : > { %s1082_s10 = sshra.s32 %s665_s15, 4  ;;  %s1083_s10 = int_to_ptr.hbm [resolvable:$true] %s1082_s10 }
 0x2b2   : > { %s1084_s0 = scalar_lea.hbm %s1083_s10, 8  ;;  %p1089_p11 = scmp.lt.s32.totalorder %s1083_s10, %s1620_s3 }
 0x2b3   : > { %p1085_p9 = scmp.ne.s32.totalorder %s1083_s10, %s1084_s0  ;;  %p1090_p12 = scmp.lt.s32.totalorder %s1088_s2, %s1084_s0 }
 0x2b5   : > { %p1086_p10 = pnand %p1085_p9, %p1395_p5  ;;  %p1091_p13 = por %p1090_p12, %p1089_p11 }
 0x2b7   : > { %p1087_p6 = pneg %p1086_p10 }
 0x2b9   : > { %p1092_p0 = pnand %p1091_p13, %p1087_p6 }
 0x2bb   : > { %1095 = shalt.err (!%p1092_p0)
}
 0x2bc   : > { %887 = dma.vmem_to_hbm [thread:$0]  (%p1395_p5), %s663_s17, 128, %s665_s15, %s650_s8  }
 0x2bd PF: > { %p893_p1 = scmp.ge.s32.totalorder %s1222_s7, 2  ;;  %s676_s1 = sand.u32 1, %s1166_s18  }
 0x2be   : > { %s677_s25 = scalar_lea.sflag [#allocation7], %s676_s1 }
 0x2bf   : > { %p890_p2 = pnand %p893_p1, %p1399_p7 }
 0x2c1   : > { %p891_p3 = pneg %p890_p2 }
 0x2c3   : > { %1161 = dma.done.wait (%p891_p3), %s677_s25, 128  }
 0x2c4   : > { %1163 = vsyncadd (%p891_p3), %s677_s25, 4294967168  ;;  %s21_s7 = sadd.s32 1, %s1222_s7   ;;  %s1623_s5 = sld [smem:[#allocation11_spill]] }
 0x2c5   : > { %p1527_p8 = scmp.ge.s32.totalorder %s21_s7, 10   ;;  %s1624_s20 = sld [smem:[#allocation19_spill]] }
 0x2c6   : > { %s1625_s12 = sld [smem:[#allocation17_spill]]  ;;  %s1632_s18 = smov %s1170_s19 }
 0x2c7   : > { %s1626_s24 = sld [smem:[#allocation12_spill]]  ;;  %s1634_s21 = smov %s1182_s22 }
 0x2c8   : > { %s1627_s25 = sld [smem:[#allocation18_spill]]  ;;  %s1635_s22 = smov %s1186_s23 }
 0x2c9   : > { %s1628_s28 = sld [smem:[#allocation13_spill]]  ;;  %s1637_s26 = smov %s1210_s29 }
 0x2ca   : > { %s1629_s4 = sld [smem:[#allocation14_spill]]  ;;  %s1633_s19 = smov %s1623_s5 }
 0x2cb   : > { %s1630_s9 = sld [smem:[#allocation15_spill]]  ;;  %s1638_s27 = smov %s1214_s30 }
 0x2cc   : > { %s1631_s6 = sld [smem:[#allocation16_spill]]  ;;  %s1636_s23 = smov %s1625_s12 }
 0x2cd   :  { %20 = sbr.rel (!%p1527_p8) target bundleno = 18 (0x12), region = 156 }
 0x2d0   : > { %s1639_s29 = smov %s1629_s4 }
 0x2d1   : > { %s1640_s30 = smov %s1630_s9 }
 0x2d2   :  { %683 = vsyncpa [#allocation6], 1 }
 0x2d3   :  { %685 = vsyncpa [#allocation6 + $0x1], 1 }
 0x2d4   :  { %686 = vsyncpa [#allocation7], 1 }
 0x2d5   :  { %688 = vsyncpa [#allocation7 + $0x1], 1 }

</bundles_post_ra>
